<compile_context>
chip_gen: v7x
topology: tpu7x:2x2x1
jax: 0.10.0
libtpu: 0.0.40
codegen_flags: <defaults>
</compile_context>

<pallas_src>
import jax
import jax.numpy as jnp
from jax.experimental import pallas as pl
from jax.experimental.pallas import tpu as pltpu


def _dqn_mlp_kernel(x_ref, w1_ref, b1_ref, w2_ref, b2_ref, out_ref):
    """Fused 2-layer MLP for one batch tile: out = relu(x @ W1 + b1) @ W2 + b2."""
    # Hidden layer: MXU matmul (bf16 operands, f32 accumulation), then f32
    # bias add + ReLU on the VPU.
    h = jnp.dot(x_ref[...], w1_ref[...], preferred_element_type=jnp.float32)
    h = jnp.maximum(h + b1_ref[...], 0.0)          # (TB, H) f32

    # Output layer: feed the MXU its native dtype again, accumulate in f32,
    # add bias in f32, store a lane-dense (TB, A_pad) block.
    q = jnp.dot(h.astype(w2_ref.dtype), w2_ref[...],
                preferred_element_type=jnp.float32)
    out_ref[...] = q + b2_ref[...]


def dqn_forward(x, w1, b1, w2, b2, *, batch_tile=256, mxu_dtype=jnp.bfloat16):
    """Run the DQN MLP forward pass in a single fused Pallas kernel.

    Args:
      x:  (B, input_dim) float32 state batch.
      w1: (input_dim, hidden_dim) float32 (transposed PyTorch layout).
      b1: (hidden_dim,) float32.
      w2: (hidden_dim, num_actions) float32 (transposed PyTorch layout).
      b2: (num_actions,) float32.
      batch_tile: rows per grid step for large batches. A multiple of 256
        matches the v6e/v7x 256x256 MXU; use 128 on v5e.
      mxu_dtype: dtype fed to the MXU (bf16 halves HBM->VMEM bytes; pass
        jnp.float32 for exact-f32 math). Accumulation / bias / ReLU stay f32.

    Returns:
      (B, num_actions) float32 Q-values, identical semantics to the PyTorch
      module's forward (up to the chosen MXU input precision).
    """
    B, D = x.shape
    H = w1.shape[1]
    A = w2.shape[1]

    # Lane-dense output: pad the action dim to a multiple of 128 lanes.
    A_pad = 128 * pl.cdiv(A, 128)

    # Batch tiling: small batches use one whole-array tile; large batches are
    # split into `batch_tile`-row blocks.
    sublane = 8 * (4 // jnp.dtype(mxu_dtype).itemsize)   # 8 for f32, 16 for bf16
    if B >= batch_tile:
        tb = batch_tile
    else:
        tb = sublane * pl.cdiv(B, sublane)
    b_pad = tb * pl.cdiv(B, tb)

    # Pad / cast operands. Zero padding keeps the valid region exact.
    x_p = jnp.pad(x, ((0, b_pad - B), (0, 0))).astype(mxu_dtype)
    w1_c = w1.astype(mxu_dtype)
    b1_2d = b1.reshape(1, H).astype(jnp.float32)
    w2_c = jnp.pad(w2, ((0, 0), (0, A_pad - A))).astype(mxu_dtype)
    b2_2d = jnp.pad(b2, (0, A_pad - A)).reshape(1, A_pad).astype(jnp.float32)

    out_shape = jax.ShapeDtypeStruct((b_pad, A_pad), jnp.float32)

    if b_pad == tb:
        # Single tile (e.g. online acting, B=2): skip the grid / pipeline
        # machinery -- no double buffering, no per-step overhead. All operands
        # are whole-array VMEM refs.
        out = pl.pallas_call(
            _dqn_mlp_kernel,
            out_shape=out_shape,
            in_specs=[pl.BlockSpec(memory_space=pltpu.MemorySpace.VMEM)] * 5,
            out_specs=pl.BlockSpec(memory_space=pltpu.MemorySpace.VMEM),
        )(x_p, w1_c, b1_2d, w2_c, b2_2d)
    else:
        # Replay-batch path: grid over batch tiles. x / out blocks follow the
        # grid index; weights & biases map to block (0, 0) so they are fetched
        # once and stay VMEM-resident for every tile. The batch axis is
        # "parallel" so v7x's two TensorCores split the grid steps.
        out = pl.pallas_call(
            _dqn_mlp_kernel,
            out_shape=out_shape,
            grid=(b_pad // tb,),
            in_specs=[
                pl.BlockSpec((tb, D), lambda i: (i, 0)),       # x: per-tile
                pl.BlockSpec((D, H), lambda i: (0, 0)),        # W1: resident
                pl.BlockSpec((1, H), lambda i: (0, 0)),        # b1: resident
                pl.BlockSpec((H, A_pad), lambda i: (0, 0)),    # W2: resident
                pl.BlockSpec((1, A_pad), lambda i: (0, 0)),    # b2: resident
            ],
            out_specs=pl.BlockSpec((tb, A_pad), lambda i: (i, 0)),
            compiler_params=pltpu.CompilerParams(
                dimension_semantics=("parallel",),
            ),
        )(x_p, w1_c, b1_2d, w2_c, b2_2d)

    return out[:B, :A]


def _reference(x, w1, b1, w2, b2, mxu_dtype=jnp.bfloat16):
    """Pure-JAX reference using the same cast/accumulation pattern as the kernel."""
    h = jnp.dot(x.astype(mxu_dtype), w1.astype(mxu_dtype),
                preferred_element_type=jnp.float32)
    h = jnp.maximum(h + b1, 0.0)
    q = jnp.dot(h.astype(mxu_dtype), w2.astype(mxu_dtype),
                preferred_element_type=jnp.float32)
    return q + b2


def _xavier_uniform(key, fan_in, fan_out):
    """Xavier/Glorot uniform init matching nn.init.xavier_uniform_ semantics.

    Returns the weight already transposed to (fan_in, fan_out) layout.
    """
    limit = jnp.sqrt(6.0 / (fan_in + fan_out))
    return jax.random.uniform(
        key, (fan_in, fan_out), dtype=jnp.float32, minval=-limit, maxval=limit
    )


def init_dqn_params(key, input_dim, hidden_dim, num_actions):
    k1, k2 = jax.random.split(key)
    w1 = _xavier_uniform(k1, input_dim, hidden_dim)       # Linear1 weight^T
    b1 = jnp.zeros((hidden_dim,), jnp.float32)            # Linear1 bias (zeros)
    w2 = _xavier_uniform(k2, hidden_dim, num_actions)     # Linear2 weight^T
    b2 = jnp.zeros((num_actions,), jnp.float32)           # Linear2 bias (zeros)
    return w1, b1, w2, b2


if __name__ == "__main__":
    # Small shapes consistent with the module's forward: x is (batch, input_dim).
    batch = 2
    input_dim = 16
    hidden_dim = 64
    num_actions = 4

    key = jax.random.PRNGKey(0)
    key_x, key_p, key_big = jax.random.split(key, 3)

    x = jax.random.normal(key_x, (batch, input_dim), dtype=jnp.float32)
    w1, b1, w2, b2 = init_dqn_params(key_p, input_dim, hidden_dim, num_actions)

    # 1) Tiny online-inference batch -> single-tile, gridless VMEM path.
    q = dqn_forward(x, w1, b1, w2, b2)
    q = jax.block_until_ready(q)
    assert q.shape == (batch, num_actions)
    ref = _reference(x, w1, b1, w2, b2)
    assert jnp.allclose(q, ref, atol=1e-3, rtol=1e-3), "kernel mismatch (small batch)"
    ref_f32 = jnp.maximum(x @ w1 + b1, 0.0) @ w2 + b2
    assert jnp.allclose(q, ref_f32, atol=5e-2, rtol=5e-2), "kernel far from f32 reference"

    # 2) Replay-batch sized input -> batched grid path (grid=(2,), batch_tile=256,
    #    weights VMEM-resident across tiles, batch axis parallel).
    big_batch = 512
    x_big = jax.random.normal(key_big, (big_batch, input_dim), dtype=jnp.float32)
    q_big = dqn_forward(x_big, w1, b1, w2, b2)
    q_big = jax.block_until_ready(q_big)
    assert q_big.shape == (big_batch, num_actions)
    ref_big = _reference(x_big, w1, b1, w2, b2)
    assert jnp.allclose(q_big, ref_big, atol=1e-3, rtol=1e-3), "kernel mismatch (big batch)"

    print("KERNEL_OK")
</pallas_src>

<mosaic_0001>
module attributes {stable_mosaic.version = 11 : i64} {
  func.func @_dqn_mlp_kernel(%arg0: memref<16x16xbf16, #tpu.memory_space<vmem>>, %arg1: memref<16x64xbf16, #tpu.memory_space<vmem>>, %arg2: memref<1x64xf32, #tpu.memory_space<vmem>>, %arg3: memref<64x128xbf16, #tpu.memory_space<vmem>>, %arg4: memref<1x128xf32, #tpu.memory_space<vmem>>, %arg5: memref<16x128xf32, #tpu.memory_space<vmem>>) attributes {dimension_semantics = [], scalar_prefetch = 0 : i64, scratch_operands = 0 : i64, tpu.core_type = #tpu.core_type<tc>} {
    %c0 = arith.constant 0 : index
    %c0_0 = arith.constant 0 : index
    %0 = vector.load %arg0[%c0, %c0_0] : memref<16x16xbf16, #tpu.memory_space<vmem>>, vector<16x16xbf16>
    %c0_1 = arith.constant 0 : index
    %c0_2 = arith.constant 0 : index
    %1 = vector.load %arg1[%c0_1, %c0_2] : memref<16x64xbf16, #tpu.memory_space<vmem>>, vector<16x64xbf16>
    %cst = arith.constant dense<0.000000e+00> : vector<16x64xf32>
    %2 = tpu.matmul %0, %1, %cst {dimension_numbers = #tpu.dot_dimension_numbers<[1], [0], [0], [1], [0, 0, 1, 1], [], []>} : vector<16x16xbf16>, vector<16x64xbf16>, vector<16x64xf32> -> vector<16x64xf32>
    %c0_3 = arith.constant 0 : index
    %c0_4 = arith.constant 0 : index
    %3 = vector.load %arg2[%c0_3, %c0_4] : memref<1x64xf32, #tpu.memory_space<vmem>>, vector<1x64xf32>
    %4 = vector.broadcast %3 : vector<1x64xf32> to vector<16x64xf32>
    %5 = arith.addf %2, %4 : vector<16x64xf32>
    %cst_5 = arith.constant 0.000000e+00 : f32
    %6 = vector.broadcast %cst_5 : f32 to vector<16x64xf32>
    %7 = arith.maximumf %5, %6 : vector<16x64xf32>
    %8 = arith.truncf %7 : vector<16x64xf32> to vector<16x64xbf16>
    %c0_6 = arith.constant 0 : index
    %c0_7 = arith.constant 0 : index
    %9 = vector.load %arg3[%c0_6, %c0_7] : memref<64x128xbf16, #tpu.memory_space<vmem>>, vector<64x128xbf16>
    %cst_8 = arith.constant dense<0.000000e+00> : vector<16x128xf32>
    %10 = tpu.matmul %8, %9, %cst_8 {dimension_numbers = #tpu.dot_dimension_numbers<[1], [0], [0], [1], [0, 0, 1, 1], [], []>} : vector<16x64xbf16>, vector<64x128xbf16>, vector<16x128xf32> -> vector<16x128xf32>
    %c0_9 = arith.constant 0 : index
    %c0_10 = arith.constant 0 : index
    %11 = vector.load %arg4[%c0_9, %c0_10] : memref<1x128xf32, #tpu.memory_space<vmem>>, vector<1x128xf32>
    %12 = vector.broadcast %11 : vector<1x128xf32> to vector<16x128xf32>
    %13 = arith.addf %10, %12 : vector<16x128xf32>
    %c0_11 = arith.constant 0 : index
    %c0_12 = arith.constant 0 : index
    %14 = vector.load %arg5[%c0_11, %c0_12] : memref<16x128xf32, #tpu.memory_space<vmem>>, vector<16x128xf32>
    tpu.vector_store %arg5[%c0_11, %c0_12], %13 {strides = array<i32>} : memref<16x128xf32, #tpu.memory_space<vmem>>, vector<16x128xf32>,
    return
  }
}

</mosaic_0001>

<bundles_post_ra>
// kernel: tpu_custom_call.1
= control target key start
LH: loop header
LB: loop body
LE: loop exit
PB: predicated region body
PF: predicated region fallthrough
CT: control target
= control target key end

     0   :  { %10 = vsyncpa [#allocation3], 0  ;;  %s492_s0 = inlined_call_operand.hbm [shape: bf16[16,16], index: 0, kind: input, shape index: {}]   ;;  %s493_s1 = inlined_call_operand.hbm [shape: bf16[16,64], index: 1, kind: input, shape index: {}]   ;;  %s494_s2 = inlined_call_operand.vmem [shape: f32[1,64], index: 2, kind: input, shape index: {}]   ;;  %s495_s3 = inlined_call_operand.hbm [shape: bf16[64,128], index: 3, kind: input, shape index: {}]   ;;  %s496_s4 = inlined_call_operand.vmem [shape: f32[1,128], index: 4, kind: input, shape index: {}]   ;;  %s497_s5 = inlined_call_operand.hbm [shape: f32[16,128], index: 5, kind: output, shape index: {}]  }
   0x1   :  { %11 = vsyncpa [#allocation6], 0 }
   0x2   :  { %12 = vsyncpa [#allocation4], 0  ;;  %s382_s18 = smov [#allocation5]   ;;  %s383_s20 = smov [#allocation2]  }
   0x3   :  { %s30_s19 = sshll.u32 %s382_s18, 4  ;;  %s18_s21 = sshll.u32 %s383_s20, 4  ;;  %s31_s19 = int_to_ptr.vmem [resolvable:$true] %s30_s19  ;;  %s422_s21 = int_to_ptr.vmem [resolvable:$true] %s18_s21 }
   0x4   :  { %s288_s24 = scalar_lea.hbm %s493_s1, 128 }
   0x5   :  { %p289_p0 = scmp.ne.s32.totalorder %s493_s1, %s288_s24  ;;  %p292_p1 = scmp.lt.u32.totalorder %s288_s24, %s493_s1 }
   0x7   :  { %p294_p2 = pnand %p292_p1, %p289_p0 }
   0x9   :  { %297 = shalt.err (!%p294_p2)
}
   0xa   :  { %s298_s29 = scalar_lea.vmem %s31_s19, 128  ;;  %p303_p4 = scmp.lt.s32.totalorder %s31_s19, %s31_s19 }
   0xb   :  { %p299_p3 = scmp.ne.s32.totalorder %s31_s19, %s298_s29  ;;  %p304_p5 = scmp.lt.s32.totalorder %s298_s29, %s298_s29 }
   0xd   :  { %p305_p6 = por %p304_p5, %p303_p4 }
   0xf   :  { %p306_p7 = pnand %p305_p6, %p299_p3 }
  0x11   :  { %309 = shalt.err (!%p306_p7)
}
  0x12   :  { %s384_s30 = smov 64   ;;  %s385_s6 = smov 4  }
  0x13   :  { %36 = dma.hbm_to_vmem [thread:$0]  %s493_s1, 128, %s31_s19, [#allocation6], %s384_s30, %s384_s30, %s385_s6  }
  0x14   :  { %s310_s11 = scalar_lea.hbm %s492_s0, 128 }
  0x15   :  { %p311_p8 = scmp.ne.s32.totalorder %s492_s0, %s310_s11  ;;  %p314_p9 = scmp.lt.u32.totalorder %s310_s11, %s492_s0 }
  0x17   :  { %p316_p10 = pnand %p314_p9, %p311_p8 }
  0x19   :  { %319 = shalt.err (!%p316_p10)
}
  0x1a   :  { %s320_s16 = scalar_lea.vmem %s422_s21, 128  ;;  %p325_p12 = scmp.lt.s32.totalorder %s422_s21, %s422_s21 }
  0x1b   :  { %p321_p11 = scmp.ne.s32.totalorder %s422_s21, %s320_s16  ;;  %p326_p13 = scmp.lt.s32.totalorder %s320_s16, %s320_s16 }
  0x1d   :  { %p327_p0 = por %p326_p13, %p325_p12 }
  0x1f   :  { %p328_p1 = pnand %p327_p0, %p321_p11 }
  0x21   :  { %331 = shalt.err (!%p328_p1)
}
  0x22   :  { %24 = dma.hbm_to_vmem [thread:$0]  %s492_s0, 128, %s422_s21, [#allocation3], %s384_s30, %s384_s30, %s385_s6  }
  0x23   :  { %s386_s18 = smov [#allocation7]   ;;  %s332_s23 = scalar_lea.hbm %s495_s3, 512 }
  0x24   :  { %s44_s19 = sshll.u32 %s386_s18, 4  ;;  %p333_p2 = scmp.ne.s32.totalorder %s495_s3, %s332_s23  ;;  %s45_s19 = int_to_ptr.vmem [resolvable:$true] %s44_s19 }
  0x25   :  { %p336_p3 = scmp.lt.u32.totalorder %s332_s23, %s495_s3 }
  0x27   :  { %p338_p4 = pnand %p336_p3, %p333_p2 }
  0x29   :  { %341 = shalt.err (!%p338_p4)
}
  0x2a   :  { %s342_s28 = scalar_lea.vmem %s45_s19, 512  ;;  %p347_p6 = scmp.lt.s32.totalorder %s45_s19, %s45_s19 }
  0x2b   :  { %p343_p5 = scmp.ne.s32.totalorder %s45_s19, %s342_s28  ;;  %p348_p7 = scmp.lt.s32.totalorder %s342_s28, %s342_s28 }
  0x2d   :  { %p349_p8 = por %p348_p7, %p347_p6 }
  0x2f   :  { %p350_p9 = pnand %p349_p8, %p343_p5 }
  0x31   :  { %353 = shalt.err (!%p350_p9)
}
  0x32   :  { %50 = dma.hbm_to_vmem [thread:$0]  %s495_s3, 512, %s45_s19, [#allocation6], %s384_s30, %s384_s30, %s385_s6  }
  0x33   :  { %376 = dma.done.wait [#allocation3], 128  }
  0x34   :  { %377 = vsyncadd [#allocation3], 4294967168 }
  0x35   :  { %378 = dma.done.wait [#allocation6], 640  }
  0x36   :  { %379 = vsyncadd [#allocation6], 4294966656  ;;  %v387_v0 = vmov 0.0   ;;  %vm388_vm0 = vmmov 0   ;;  %v282_v1 = vld [vmem:[#allocation5] sm:$0xff]   ;;  %v283_v2 = vld [vmem:[#allocation2] sm:$0xff]  }
  0x37   :  { %254 = vmatprep.subr.bf16.mxu0 %v387_v0  ;;  %256 = vmatprep.mubr.msk.bf16.mxu0 %vm388_vm0, %v387_v0  ;;  %vm85_vm1 = vcmask 130048   ;;  %v284_v3 = vld [vmem:[#allocation7] sm:$0xff]   ;;  %v285_v4 = vld [vmem:[#allocation7 + $0x8] sm:$0xff]   ;;  %v286_v5 = vld [vmem:[#allocation7 + $0x10] sm:$0xff]   ;;  %vm172_vm2 = vcmask 523264   ;;  %s389_s7 = smov [#allocation8]  }
  0x38   :  { %260 = vmatprep.subr.bf16.mxu1 %v387_v0  ;;  %268 = vmatprep.mubr.msk.bf16.mxu1 %vm388_vm0, %v387_v0  ;;  %v287_v6 = vld [vmem:[#allocation7 + $0x18] sm:$0xff]   ;;  %v237_v7 = vld [vmem:[%s494_s2] ss:$0 sm:$0xff]  ;;  %s224_s8 = sshll.u32 %s389_s7, 4  ;;  %s225_s8 = int_to_ptr.vmem [resolvable:$true] %s224_s8 }
  0x39   :  { %255 = vmatpush3.bf16.msra.mxu0 %v282_v1  ;;  %261 = vmatpush3.bf16.msra.mxu1 %v284_v3  ;;  %v241_v17 = vld [vmem:[%s496_s4] ss:$0 sm:$0xff]  ;;  %s354_s2 = scalar_lea.vmem %s225_s8, 256  ;;  %p359_p11 = scmp.lt.s32.totalorder %s225_s8, %s225_s8 }
  0x3a   :  { %262 = vmatprep.subr.bf16.mxu1 %v387_v0  ;;  %p355_p10 = scmp.ne.s32.totalorder %s225_s8, %s354_s2  ;;  %p360_p12 = scmp.lt.s32.totalorder %s354_s2, %s354_s2 }
  0x3c   :  { %257 = vmatmul.mubr.msk.bf16.vlgmr.msra.gmra.mrb[0].mxu0 %vm85_vm1, %v283_v2  ;;  %p361_p13 = por %p360_p12, %p359_p11 }
  0x3d   :  { %263 = vmatpush3.bf16.msra.mxu1 %v285_v4 }
  0x3e   :  { %264 = vmatprep.subr.bf16.mxu1 %v387_v0  ;;  %p362_p0 = pnand %p361_p13, %p355_p10 }
  0x41   :  { %265 = vmatpush3.bf16.msra.mxu1 %v286_v5 }
  0x42   :  { %266 = vmatprep.subr.bf16.mxu1 %v387_v0 }
  0x45   :  { %267 = vmatpush3.bf16.msra.mxu1 %v287_v6 }
 0x10f   :  { %v123_v8 = vpop.f32.mrb[0].mxu0 }
 0x110   :  { %v124_v9 = vadd.f32 %v237_v7, %v123_v8  ;;  %v258_v10 = vpop.f32.mrb[1].mxu0 }
 0x111   :  { %v126_v11 = vpop.f32.mrb[2].mxu0 }
 0x112   :  { %v127_v12 = vadd.f32 %v237_v7, %v126_v11  ;;  %v259_v13 = vpop.f32.mrb[3].mxu0  ;;  %v130_v14 = vmax.f32 %v124_v9, 0.0 }
 0x114   :  { %v131_v15 = vmax.f32 %v127_v12, 0.0 }
 0x116   :  { %v132_v16 = vpack.c.bf16 %v131_v15, %v130_v14 }
 0x118   :  { %269 = vmatmul.mubr.msk.bf16.vlgmr.msra.gmra.mrb[0].mxu1 %vm172_vm2, %v132_v16 }
 0x1eb   :  { %v210_v18 = vpop.f32.mrb[0].mxu1 }
 0x1ec   :  { %v211_v19 = vadd.f32 %v241_v17, %v210_v18  ;;  %v270_v20 = vpop.f32.mrb[1].mxu1 }
 0x1ed   :  { %v213_v21 = vpop.f32.mrb[2].mxu1 }
 0x1ee   :  { %217 = vst [vmem:[#allocation8] sm:$0xff] %v211_v19  ;;  %v214_v22 = vadd.f32 %v241_v17, %v213_v21  ;;  %v271_v23 = vpop.f32.mrb[3].mxu1 }
 0x1f0   :  { %218 = vst [vmem:[#allocation8 + $0x8] sm:$0xff] %v214_v22 }
 0x1f1   :  { %365 = shalt.err (!%p362_p0)
}
 0x1f2   :  { %s366_s10 = scalar_lea.hbm %s497_s5, 256 }
 0x1f3   :  { %p367_p1 = scmp.ne.s32.totalorder %s497_s5, %s366_s10  ;;  %p370_p2 = scmp.lt.u32.totalorder %s366_s10, %s497_s5 }
 0x1f5   :  { %p372_p3 = pnand %p370_p2, %p367_p1 }
 0x1f7   :  { %375 = shalt.err (!%p372_p3)
}
 0x1f8   :  { %s390_s15 = smov 128   ;;  %s391_s16 = smov 8  }
 0x1f9   :  { %230 = dma.vmem_to_hbm [thread:$0]  %s225_s8, 256, %s497_s5, [#allocation4], %s390_s15, %s390_s15, %s391_s16  }
 0x1fa   :  { %380 = dma.done.wait [#allocation4], 256  }
 0x1fb   :  { %381 = vsyncadd [#allocation4], 4294967040 }
 0x1fc   :  { %234 = vsyncpa [#allocation3], 1 }
 0x1fd   :  { %235 = vsyncpa [#allocation6], 1 }
 0x1fe   :  { %236 = vsyncpa [#allocation4], 1 }

</bundles_post_ra>
